<compile_context>
chip_gen: v7x
topology: tpu7x:2x2x1
jax: 0.10.0
libtpu: 0.0.40
codegen_flags: <defaults>
</compile_context>

<pallas_src>
import functools

import jax
import jax.numpy as jnp
from jax.experimental import pallas as pl
from jax.experimental.pallas import tpu as pltpu


def _gat_kernel(h_ref, w_ref, a12_ref, adj_ref, out_ref, *, alpha, concat):
    # h_ref   : (Bt, N, F)  mxu_dtype   last-time-step graph signal
    # w_ref   : (F, O)      mxu_dtype
    # a12_ref : (2, O)      f32         row 0 = a[:O, 0], row 1 = a[O:, 0]
    # adj_ref : (N, N)      f32
    # out_ref : (Bt, N, O)  f32
    bt = h_ref.shape[0]
    o = w_ref.shape[1]
    mxu_dtype = h_ref.dtype

    h = h_ref[...]                                                 # (Bt, N, F)
    w_b = jnp.broadcast_to(w_ref[...][None], (bt,) + w_ref.shape)  # (Bt, F, O)

    # Wh = h @ W  -- MXU, narrow operands, f32 accumulation.
    Wh = jnp.einsum("bnf,bfo->bno", h, w_b,
                    preferred_element_type=jnp.float32)            # (Bt, N, O) f32
    Wh_mx = Wh.astype(mxu_dtype)

    a12 = a12_ref[...]                                             # (2, O) f32
    a1 = a12[0:1, :][None]                                         # (1, 1, O)
    a2 = a12[1:2, :][None]                                         # (1, 1, O)

    # attention logits: e[b, i, j] = <Wh[b, i], a1> + <Wh[b, j], a2>
    Wh1 = jnp.sum(Wh * a1, axis=-1, keepdims=True)                 # (Bt, N, 1) f32 (VPU)
    a2_b = jnp.broadcast_to(a2.astype(mxu_dtype), (bt, 1, o))      # (Bt, 1, O)
    Wh2_row = jnp.einsum("bqo,bno->bqn", a2_b, Wh_mx,
                         preferred_element_type=jnp.float32)       # (Bt, 1, N)
    e = Wh1 + Wh2_row                                              # (Bt, N, N)
    e = jnp.where(e > 0, e, alpha * e)                             # LeakyReLU(alpha)

    # adjacency mask + row softmax (torch dim=1 of (N, N) == last axis here)
    logits = jnp.where(adj_ref[...][None] > 0, e, jnp.float32(-9e15))
    m = jnp.max(logits, axis=-1, keepdims=True)
    p = jnp.exp(logits - m)
    denom = jnp.sum(p, axis=-1, keepdims=True)
    att = p * pl.reciprocal(denom, approx=True)                    # EUP reciprocal
    # TODO(synk): F.dropout(att, p) skipped -- inference (training=False) is a no-op.

    h_prime = jnp.einsum("bnm,bmo->bno", att.astype(mxu_dtype), Wh_mx,
                         preferred_element_type=jnp.float32)       # (Bt, N, O) f32

    if concat:
        # ELU.  expm1(x) == tanh(x/2) * (exp(x) + 1): keeps expm1's precision
        # near 0 while only using Mosaic-native EUP primitives (exp, tanh).
        xn = jnp.minimum(h_prime, 0.0)
        em1 = jnp.tanh(0.5 * xn) * (jnp.exp(xn) + 1.0)
        h_prime = jnp.where(h_prime > 0, h_prime, em1)

    out_ref[...] = h_prime.astype(out_ref.dtype)


def _pick_batch_tile(batch, max_tile=8):
    """Largest divisor of `batch` <= max_tile, preferring >= 2 grid steps (v7x)."""
    divisors = [d for d in range(1, min(batch, max_tile) + 1) if batch % d == 0]
    for d in reversed(divisors):
        if batch // d >= 2:
            return d
    return divisors[-1]


def graph_attention_layer(x, adj, W, a, *, alpha=0.2, concat=True,
                          mxu_dtype=jnp.bfloat16):
    """x: (B, N, F, T); adj: (N, N); W: (F, O); a: (2*O, 1) -> (B, N, O, 1)."""
    B, N, F_in, T = x.shape
    O = W.shape[1]

    # Only the last time step survives the torch loop (outputs overwritten each
    # iteration).  Slice + cast fuse into one small XLA op; the narrow dtype
    # halves the intermediate's HBM round-trip and feeds the MXU natively.
    h_last = x[:, :, :, T - 1].astype(mxu_dtype)             # (B, N, F)
    a12 = a[:, 0].reshape(2, O).astype(jnp.float32)          # row0 = a1, row1 = a2

    Bt = _pick_batch_tile(B)
    grid = (B // Bt,)

    kernel = functools.partial(_gat_kernel, alpha=float(alpha), concat=bool(concat))

    out = pl.pallas_call(
        kernel,
        out_shape=jax.ShapeDtypeStruct((B, N, O), jnp.float32),
        grid_spec=pltpu.PrefetchScalarGridSpec(
            num_scalar_prefetch=0,
            grid=grid,
            in_specs=[
                pl.BlockSpec((Bt, N, F_in), lambda g: (g, 0, 0)),   # graph signal
                pl.BlockSpec((F_in, O), lambda g: (0, 0)),          # W      (resident)
                pl.BlockSpec((2, O), lambda g: (0, 0)),             # [a1; a2]
                pl.BlockSpec((N, N), lambda g: (0, 0)),             # adj    (resident)
            ],
            out_specs=pl.BlockSpec((Bt, N, O), lambda g: (g, 0, 0)),
        ),
        compiler_params=pltpu.CompilerParams(
            dimension_semantics=("parallel",)),
    )(h_last, W.astype(mxu_dtype), a12, adj.astype(jnp.float32))

    # torch: stack -> permute(0,3,2,1) -> permute(0,2,1,3)  ==> (B, N, O, 1)
    return out[..., None]


def _reference(x, adj, W, a, alpha=0.2, mxu_dtype=jnp.float32):
    """Pure-JAX reference (last time step only).  `mxu_dtype` mirrors the
    kernel's narrow-matmul casts so the comparison is precision-matched."""
    O = W.shape[1]
    h = x[:, :, :, -1].astype(mxu_dtype)
    Wm = W.astype(mxu_dtype)
    Wh = jnp.einsum("bnf,fo->bno", h, Wm, preferred_element_type=jnp.float32)
    a1 = a[:O, 0].astype(jnp.float32)
    a2 = a[O:, 0].astype(jnp.float32)
    Wh1 = jnp.sum(Wh * a1[None, None, :], axis=-1, keepdims=True)          # (B, N, 1)
    Wh2 = jnp.einsum("bno,o->bn", Wh.astype(mxu_dtype), a2.astype(mxu_dtype),
                     preferred_element_type=jnp.float32)[:, None, :]       # (B, 1, N)
    e = Wh1 + Wh2
    e = jnp.where(e > 0, e, alpha * e)
    att = jnp.where(adj[None] > 0, e, jnp.float32(-9e15))
    att = jax.nn.softmax(att, axis=2)
    hp = jnp.einsum("bnm,bmo->bno", att.astype(mxu_dtype), Wh.astype(mxu_dtype),
                    preferred_element_type=jnp.float32)
    hp = jnp.where(hp > 0, hp, jnp.expm1(hp))                              # ELU
    return hp[..., None]


if __name__ == "__main__":
    key = jax.random.PRNGKey(0)
    kx, kadj, kW, ka = jax.random.split(key, 4)

    B, N, F_in, T, O = 4, 16, 8, 4, 8

    x = jax.random.normal(kx, (B, N, F_in, T), dtype=jnp.float32)
    adj = (jax.random.uniform(kadj, (N, N)) > 0.5).astype(jnp.float32)
    adj = jnp.maximum(adj, jnp.eye(N, dtype=jnp.float32))   # self-loops -> every row valid

    # xavier_uniform_ with gain = 1.414 (deterministic, in-script)
    gain = 1.414
    w_bound = gain * (6.0 / (F_in + O)) ** 0.5
    W = jax.random.uniform(kW, (F_in, O), jnp.float32, -w_bound, w_bound)
    a_bound = gain * (6.0 / (2 * O + 1)) ** 0.5
    a = jax.random.uniform(ka, (2 * O, 1), jnp.float32, -a_bound, a_bound)

    out = graph_attention_layer(x, adj, W, a, alpha=0.2, concat=True)
    out = jax.block_until_ready(out)
    assert out.shape == (B, N, O, 1), out.shape

    # Precision-matched reference (same bf16 MXU casts): residual differences are
    # accumulation order + approx-reciprocal epsilon only.
    expected_bf16 = _reference(x, adj, W, a, alpha=0.2, mxu_dtype=jnp.bfloat16)
    err_matched = float(jnp.max(jnp.abs(out - expected_bf16)))
    assert err_matched < 5e-2, f"max abs err vs precision-matched ref: {err_matched}"

    # Loose sanity check against the full-f32 math (covers bf16 input epsilon).
    expected_f32 = _reference(x, adj, W, a, alpha=0.2, mxu_dtype=jnp.float32)
    err_f32 = float(jnp.max(jnp.abs(out - expected_f32)))
    assert err_f32 < 2.5e-1, f"max abs err vs f32 ref: {err_f32}"

    print("KERNEL_OK")
</pallas_src>

<mosaic_0001>
module attributes {stable_mosaic.version = 11 : i64} {
  func.func @_gat_kernel(%arg0: i32, %arg1: memref<2x16x8xbf16, #tpu.memory_space<vmem>>, %arg2: memref<8x8xbf16, #tpu.memory_space<vmem>>, %arg3: memref<2x8xf32, #tpu.memory_space<vmem>>, %arg4: memref<16x16xf32, #tpu.memory_space<vmem>>, %arg5: memref<2x16x8xf32, #tpu.memory_space<vmem>>) attributes {dimension_semantics = [#tpu.dimension_semantics<parallel>], iteration_bounds = array<i64: 2>, scalar_prefetch = 0 : i64, scratch_operands = 0 : i64, tpu.core_type = #tpu.core_type<tc>, window_params = [{transform_indices = @transform_0, window_bounds = array<i64: 2, 16, 8>}, {pipeline_mode = #tpu.pipeline_mode<synchronous>, transform_indices = @transform_1, window_bounds = array<i64: 8, 8>}, {pipeline_mode = #tpu.pipeline_mode<synchronous>, transform_indices = @transform_2, window_bounds = array<i64: 2, 8>}, {pipeline_mode = #tpu.pipeline_mode<synchronous>, transform_indices = @transform_3, window_bounds = array<i64: 16, 16>}, {transform_indices = @transform_4, window_bounds = array<i64: 2, 16, 8>}]} {
    %c0 = arith.constant 0 : index
    %c0_0 = arith.constant 0 : index
    %c0_1 = arith.constant 0 : index
    %0 = vector.load %arg1[%c0, %c0_0, %c0_1] : memref<2x16x8xbf16, #tpu.memory_space<vmem>>, vector<2x16x8xbf16>
    %c0_2 = arith.constant 0 : index
    %c0_3 = arith.constant 0 : index
    %1 = vector.load %arg2[%c0_2, %c0_3] : memref<8x8xbf16, #tpu.memory_space<vmem>>, vector<8x8xbf16>
    %2 = vector.shape_cast %1 : vector<8x8xbf16> to vector<1x8x8xbf16>
    %3 = vector.shape_cast %2 : vector<1x8x8xbf16> to vector<1x8x8xbf16>
    %4 = vector.broadcast %3 : vector<1x8x8xbf16> to vector<2x8x8xbf16>
    "tpu.trace_start"() <{level = 10 : i32, message = "bnf,bfo->bno"}> : () -> ()
    %cst = arith.constant dense<0.000000e+00> : vector<2x16x8xf32>
    %5 = tpu.matmul %0, %4, %cst {dimension_numbers = #tpu.dot_dimension_numbers<[2], [1], [1], [2], [0, 0, 0, 1, 1, 2], [0], [0]>} : vector<2x16x8xbf16>, vector<2x8x8xbf16>, vector<2x16x8xf32> -> vector<2x16x8xf32>
    "tpu.trace_stop"() : () -> ()
    %6 = arith.truncf %5 : vector<2x16x8xf32> to vector<2x16x8xbf16>
    %c0_4 = arith.constant 0 : index
    %c0_5 = arith.constant 0 : index
    %7 = vector.load %arg3[%c0_4, %c0_5] : memref<2x8xf32, #tpu.memory_space<vmem>>, vector<2x8xf32>
    %8 = vector.extract_strided_slice %7 {offsets = [0, 0], sizes = [1, 8], strides = [1, 1]} : vector<2x8xf32> to vector<1x8xf32>
    %9 = vector.shape_cast %8 : vector<1x8xf32> to vector<1x1x8xf32>
    %10 = vector.extract_strided_slice %7 {offsets = [1, 0], sizes = [1, 8], strides = [1, 1]} : vector<2x8xf32> to vector<1x8xf32>
    %11 = vector.shape_cast %10 : vector<1x8xf32> to vector<1x1x8xf32>
    %12 = vector.broadcast %9 : vector<1x1x8xf32> to vector<2x16x8xf32>
    %13 = arith.mulf %5, %12 : vector<2x16x8xf32>
    %cst_6 = arith.constant dense<0.000000e+00> : vector<2x16xf32>
    %14 = vector.multi_reduction <add>, %13, %cst_6 [2] : vector<2x16x8xf32> to vector<2x16xf32>
    %15 = vector.shape_cast %14 : vector<2x16xf32> to vector<2x16x1xf32>
    %16 = arith.truncf %11 : vector<1x1x8xf32> to vector<1x1x8xbf16>
    %17 = vector.shape_cast %16 : vector<1x1x8xbf16> to vector<1x1x8xbf16>
    %18 = vector.broadcast %17 : vector<1x1x8xbf16> to vector<2x1x8xbf16>
    "tpu.trace_start"() <{level = 10 : i32, message = "bqo,bno->bqn"}> : () -> ()
    %cst_7 = arith.constant dense<0.000000e+00> : vector<2x1x16xf32>
    %19 = tpu.matmul %18, %6, %cst_7 {dimension_numbers = #tpu.dot_dimension_numbers<[2], [2], [1], [1], [0, 0, 0, 1, 1, 1], [0], [0]>} : vector<2x1x8xbf16>, vector<2x16x8xbf16>, vector<2x1x16xf32> -> vector<2x1x16xf32>
    "tpu.trace_stop"() : () -> ()
    %20 = vector.broadcast %15 : vector<2x16x1xf32> to vector<2x16x16xf32>
    %21 = vector.broadcast %19 : vector<2x1x16xf32> to vector<2x16x16xf32>
    %22 = arith.addf %20, %21 : vector<2x16x16xf32>
    %cst_8 = arith.constant 0.000000e+00 : f32
    %23 = vector.broadcast %cst_8 : f32 to vector<2x16x16xf32>
    %24 = arith.cmpf ogt, %22, %23 : vector<2x16x16xf32>
    %cst_9 = arith.constant 2.000000e-01 : f32
    %25 = vector.broadcast %cst_9 : f32 to vector<2x16x16xf32>
    %26 = arith.mulf %25, %22 : vector<2x16x16xf32>
    %27 = arith.select %24, %22, %26 : vector<2x16x16xi1>, vector<2x16x16xf32>
    %c0_10 = arith.constant 0 : index
    %c0_11 = arith.constant 0 : index
    %28 = vector.load %arg4[%c0_10, %c0_11] : memref<16x16xf32, #tpu.memory_space<vmem>>, vector<16x16xf32>
    %29 = vector.shape_cast %28 : vector<16x16xf32> to vector<1x16x16xf32>
    %cst_12 = arith.constant 0.000000e+00 : f32
    %30 = vector.broadcast %cst_12 : f32 to vector<1x16x16xf32>
    %31 = arith.cmpf ogt, %29, %30 : vector<1x16x16xf32>
    %cst_13 = arith.constant -9.000000e+15 : f32
    %32 = vector.shape_cast %31 : vector<1x16x16xi1> to vector<1x16x16xi1>
    %33 = vector.broadcast %32 : vector<1x16x16xi1> to vector<2x16x16xi1>
    %34 = vector.broadcast %cst_13 : f32 to vector<2x16x16xf32>
    %35 = arith.select %33, %27, %34 : vector<2x16x16xi1>, vector<2x16x16xf32>
    %cst_14 = arith.constant dense<0xFF800000> : vector<2x16xf32>
    %36 = vector.multi_reduction <maximumf>, %35, %cst_14 [2] : vector<2x16x16xf32> to vector<2x16xf32>
    %37 = vector.shape_cast %36 : vector<2x16xf32> to vector<2x16x1xf32>
    %38 = vector.broadcast %37 : vector<2x16x1xf32> to vector<2x16x16xf32>
    %39 = arith.subf %35, %38 : vector<2x16x16xf32>
    %40 = math.exp %39 : vector<2x16x16xf32>
    %cst_15 = arith.constant dense<0.000000e+00> : vector<2x16xf32>
    %41 = vector.multi_reduction <add>, %40, %cst_15 [2] : vector<2x16x16xf32> to vector<2x16xf32>
    %42 = vector.shape_cast %41 : vector<2x16xf32> to vector<2x16x1xf32>
    %43 = tpu.reciprocal %42 {approx = true} : vector<2x16x1xf32> -> vector<2x16x1xf32>
    %44 = vector.broadcast %43 : vector<2x16x1xf32> to vector<2x16x16xf32>
    %45 = arith.mulf %40, %44 : vector<2x16x16xf32>
    %46 = arith.truncf %45 : vector<2x16x16xf32> to vector<2x16x16xbf16>
    "tpu.trace_start"() <{level = 10 : i32, message = "bnm,bmo->bno"}> : () -> ()
    %cst_16 = arith.constant dense<0.000000e+00> : vector<2x16x8xf32>
    %47 = tpu.matmul %46, %6, %cst_16 {dimension_numbers = #tpu.dot_dimension_numbers<[2], [1], [1], [2], [0, 0, 0, 1, 1, 2], [0], [0]>} : vector<2x16x16xbf16>, vector<2x16x8xbf16>, vector<2x16x8xf32> -> vector<2x16x8xf32>
    "tpu.trace_stop"() : () -> ()
    %cst_17 = arith.constant 0.000000e+00 : f32
    %48 = vector.broadcast %cst_17 : f32 to vector<2x16x8xf32>
    %49 = arith.minimumf %47, %48 : vector<2x16x8xf32>
    %cst_18 = arith.constant 5.000000e-01 : f32
    %50 = vector.broadcast %cst_18 : f32 to vector<2x16x8xf32>
    %51 = arith.mulf %50, %49 : vector<2x16x8xf32>
    %52 = math.tanh %51 : vector<2x16x8xf32>
    %53 = math.exp %49 : vector<2x16x8xf32>
    %cst_19 = arith.constant 1.000000e+00 : f32
    %54 = vector.broadcast %cst_19 : f32 to vector<2x16x8xf32>
    %55 = arith.addf %53, %54 : vector<2x16x8xf32>
    %56 = arith.mulf %52, %55 : vector<2x16x8xf32>
    %cst_20 = arith.constant 0.000000e+00 : f32
    %57 = vector.broadcast %cst_20 : f32 to vector<2x16x8xf32>
    %58 = arith.cmpf ogt, %47, %57 : vector<2x16x8xf32>
    %59 = arith.select %58, %47, %56 : vector<2x16x8xi1>, vector<2x16x8xf32>
    %c0_21 = arith.constant 0 : index
    %c0_22 = arith.constant 0 : index
    %c0_23 = arith.constant 0 : index
    %60 = vector.load %arg5[%c0_21, %c0_22, %c0_23] : memref<2x16x8xf32, #tpu.memory_space<vmem>>, vector<2x16x8xf32>
    tpu.vector_store %arg5[%c0_21, %c0_22, %c0_23], %59 {strides = array<i32>} : memref<2x16x8xf32, #tpu.memory_space<vmem>>, vector<2x16x8xf32>,
    return
  }
  func.func @transform_0(%arg0: i32) -> (i32, i32, i32) {
    %c0_i32 = arith.constant 0 : i32
    %c0_i32_0 = arith.constant 0 : i32
    %c0_i32_1 = arith.constant 0 : i32
    return %arg0, %c0_i32, %c0_i32_0 : i32, i32, i32
  }
  func.func @transform_1(%arg0: i32) -> (i32, i32) {
    %c0_i32 = arith.constant 0 : i32
    %c0_i32_0 = arith.constant 0 : i32
    %c0_i32_1 = arith.constant 0 : i32
    return %c0_i32, %c0_i32_0 : i32, i32
  }
  func.func @transform_2(%arg0: i32) -> (i32, i32) {
    %c0_i32 = arith.constant 0 : i32
    %c0_i32_0 = arith.constant 0 : i32
    %c0_i32_1 = arith.constant 0 : i32
    return %c0_i32, %c0_i32_0 : i32, i32
  }
  func.func @transform_3(%arg0: i32) -> (i32, i32) {
    %c0_i32 = arith.constant 0 : i32
    %c0_i32_0 = arith.constant 0 : i32
    %c0_i32_1 = arith.constant 0 : i32
    return %c0_i32, %c0_i32_0 : i32, i32
  }
  func.func @transform_4(%arg0: i32) -> (i32, i32, i32) {
    %c0_i32 = arith.constant 0 : i32
    %c0_i32_0 = arith.constant 0 : i32
    %c0_i32_1 = arith.constant 0 : i32
    return %arg0, %c0_i32, %c0_i32_0 : i32, i32, i32
  }
}

</mosaic_0001>

<bundles_post_ra>
// kernel: tpu_custom_call.1
= control target key start
LH: loop header
LB: loop body
LE: loop exit
PB: predicated region body
PF: predicated region fallthrough
CT: control target
= control target key end

     0   :  { %s850_s15 = smov 0   ;;  %s917_s0 = inlined_call_operand.vmem [shape: bf16[4,16,8], index: 0, kind: input, shape index: {}]   ;;  %s918_s1 = inlined_call_operand.vmem [shape: bf16[8,8], index: 1, kind: input, shape index: {}]   ;;  %s919_s2 = inlined_call_operand.vmem [shape: f32[2,8], index: 2, kind: input, shape index: {}]   ;;  %s920_s3 = inlined_call_operand.vmem [shape: f32[16,16], index: 3, kind: input, shape index: {}]   ;;  %s921_s4 = inlined_call_operand.vmem [shape: f32[4,16,8], index: 4, kind: output, shape index: {}]  }
   0x1 LB: > { %s700_s16 = sadd.s32 4294967295, %s821_s15   ;;  %p704_p0 = scmp.ge.s32.totalorder %s821_s15, 1  ;;  %s821_s15 = sphi %s850_s15, %s14_s15  }
   0x2   : > { %p164_p1 = scmp.lt.s32.totalorder %s821_s15, 3 }
   0x4   : > { %p165_p2 = pnand %p704_p0, %p164_p1 }
   0x5   : > { %v211_v0 = vld [vmem:[%s918_s1] sm:$0xf] (!%p165_p2)  ;;  %vm221_vm0 = vcmask (!%p165_p2), 1043456   ;;  %s705_s19 = sshll.u32 (!%p165_p2), %s700_s16, 1  ;;  %v823_v1 = vmov (!%p165_p2), 0.0   ;;  %vm824_vm1 = vmmov (!%p165_p2), 0   ;;  %v318_v5 = vlaneseq (!%p165_p2) }
   0x6   : > { %168 = sbr.rel (%p165_p2) target bundleno = 1017 (0x3f9), region = 36  ;;  %735 = vmatprep.subr.bf16.mxu0 (!%p165_p2), %v823_v1  ;;  %741 = vmatprep.subr.bf16.mxu1 (!%p165_p2), %v823_v1  ;;  %v223_v2 = vsel (!%p165_p2), %vm221_vm0, %v211_v0, 0  ;;  %p193_p3 = scmp.lt.s32.totalorder (!%p165_p2), %s705_s19, 3  ;;  %vm217_vm2 = vcmask (!%p165_p2), 64512   ;;  %v317_v8 = vld [vmem:[%s919_s2] sm:$0x3] (!%p165_p2) }
   0x7   : > { %736 = vmatpush3.bf16.msra.mxu0 (!%p165_p2), %v223_v2  ;;  %742 = vmatpush3.bf16.msra.mxu1 (!%p165_p2), %v223_v2  ;;  %v319_v6 = vshrl.u32 (!%p165_p2), %v318_v5, 7  ;;  %v338_v26 = vpack.c.bf16 (!%p165_p2), %v317_v8, %v317_v8  ;;  %v456_v37 = vld [vmem:[%s920_s3 + $0x8] sm:$0xff] (!%p165_p2)  ;;  %v455_v41 = vld [vmem:[%s920_s3] sm:$0xff] (!%p165_p2)  ;;  %vm467_vm4 = vcmask (!%p165_p2), 130048  }
   0x8   : > { %737 = vmatprep.mubr.msk.bf16.mxu0 (!%p165_p2), %vm824_vm1, %v823_v1  ;;  %743 = vmatprep.mubr.msk.bf16.mxu1 (!%p165_p2), %vm824_vm1, %v823_v1  ;;  %vm458_vm3 = vcmp.gt.f32.partialorder (!%p165_p2), %v456_v37, 0.0  ;;  %vm457_vm5 = vcmp.gt.f32.partialorder (!%p165_p2), %v455_v41, 0.0 }
   0x9   : > { %747 = vmatprep.subr.bf16.mxu0 (!%p165_p2), %v823_v1  ;;  %753 = vmatprep.subr.bf16.mxu1 (!%p165_p2), %v823_v1  ;;  %v320_v7 = vsub.s32 (!%p165_p2), 0, %v319_v6  ;;  %v340_v31 = vshrl.u32 (!%p165_p2), %v338_v26, 16 }
   0xb   : > { %v321_v9 = vrot.slane (!%p165_p2), %v317_v8, %v320_v7 }
   0xd   : > { %s923_s19 = smov (!%p193_p3, %s705_s19), 3 }
   0xe   : > { %s721_s20 = sshll.u32 %s923_s19, 3  ;;  %s722_s30 = sshll.u32 %s923_s19, 4 }
   0xf   : > { %s197_s23 = scalar_lea.vmem %s917_s0, %s721_s20  ;;  %s204_s7 = scalar_lea.vmem %s921_s4, %s722_s30 }
  0x10   : > { %v781_v3 = vld [vmem:[%s197_s23] sm:$0xff]   ;;  %v782_v4 = vld [vmem:[%s197_s23 + $0x8] sm:$0xff]  }
  0x11   : > { %738 = vmatmul.mubr.msk.bf16.vlgmr.msra.gmra.mrb[0].mxu0 %vm217_vm2, %v781_v3  ;;  %744 = vmatmul.mubr.msk.bf16.vlgmr.msra.gmra.mrb[0].mxu1 %vm217_vm2, %v782_v4 }
  0x12   : > { %749 = vmatprep.mubr.msk.bf16.mxu0 %vm824_vm1, %v823_v1  ;;  %755 = vmatprep.mubr.msk.bf16.mxu1 %vm824_vm1, %v823_v1 }
  0xe4   : > { %v259_v10 = vpop.f32.mrb[0].mxu0  ;;  %v308_v11 = vpop.f32.mrb[0].mxu1 }
  0xe5   : > { %v739_v12 = vpop.f32.mrb[1].mxu0  ;;  %v322_v13 = vmul.f32 %v321_v9, %v259_v10  ;;  %v745_v14 = vpop.f32.mrb[1].mxu1  ;;  %v324_v16 = vmul.f32 %v321_v9, %v308_v11 }
  0xe6   : > { %v262_v15 = vpop.f32.mrb[2].mxu0  ;;  %v311_v19 = vpop.f32.mrb[2].mxu1 }
  0xe7   : > { %v315_v17 = vpack.c.bf16 %v262_v15, %v259_v10  ;;  %v323_v18 = vmul.f32 %v321_v9, %v262_v15  ;;  %v740_v20 = vpop.f32.mrb[3].mxu0  ;;  %v326_v21 = vsel %vm217_vm2, %v322_v13, 0.0  ;;  %v316_v22 = vpack.c.bf16 %v311_v19, %v308_v11  ;;  %v746_v25 = vpop.f32.mrb[3].mxu1 }
  0xe8   : > { %v325_v23 = vmul.f32 %v321_v9, %v311_v19  ;;  %v332_v24 = vsel %vm217_vm2, %v324_v16, 0.0  ;;  %327 = vadd.xlane.f32.xlu0 %v326_v21 }
  0xe9   : > { %333 = vadd.xlane.f32.xlu1 %v332_v24  ;;  %v346_v27 = vsel %vm217_vm2, %v315_v17, 0  ;;  %v389_v28 = vsel %vm217_vm2, %v316_v22, 0  ;;  %v329_v30 = vsel %vm217_vm2, %v323_v18, 0.0 }
  0xea   : > { %748 = vmatpush3.bf16.xpose.msra.mxu0 %v346_v27  ;;  %v335_v29 = vsel %vm217_vm2, %v325_v23, 0.0  ;;  %754 = vmatpush3.bf16.xpose.msra.mxu1 %v389_v28 }
  0xeb   : > { %759 = vmatprep.subr.bf16.mxu0 %v823_v1  ;;  %765 = vmatprep.subr.bf16.mxu1 %v823_v1 }
  0xec   : > { %330 = vadd.xlane.f32.xlu0 %v329_v30 }
  0xed   : > { %336 = vadd.xlane.f32.xlu1 %v335_v29 }
  0xf1   : > { %750 = vmatmul.mubr.msk.bf16.vlgmr.msra.gmra.mrb[4].mxu0 %vm217_vm2, %v340_v31  ;;  %756 = vmatmul.mubr.msk.bf16.vlgmr.msra.gmra.mrb[4].mxu1 %vm217_vm2, %v340_v31 }
  0xf2   : > { %760 = vmatpush3.bf16.msra.mxu0 %v315_v17  ;;  %766 = vmatpush3.bf16.msra.mxu1 %v316_v22 }
  0xf3   : > { %761 = vmatprep.mubr.msk.bf16.mxu0 %vm824_vm1, %v823_v1  ;;  %767 = vmatprep.mubr.msk.bf16.mxu1 %vm824_vm1, %v823_v1 }
 0x175   : > { %v328_v32 = vpop.xlane.xlu0 %327 }
 0x176   : > { %v334_v33 = vpop.xlane.xlu1 %333 }
 0x179   : > { %v331_v34 = vpop.xlane.xlu0 %330 }
 0x17a   : > { %v337_v35 = vpop.xlane.xlu1 %336 }
 0x1c4   : > { %v382_v36 = vpop.f32.mrb[4].mxu0  ;;  %v425_v39 = vpop.f32.mrb[4].mxu1 }
 0x1c5   : > { %v434_v38 = vrot.slane %v382_v36, %v320_v7  ;;  %v751_v40 = vpop.f32.mrb[5].mxu0  ;;  %v438_v42 = vrot.slane %v425_v39, %v320_v7  ;;  %v757_v44 = vpop.f32.mrb[5].mxu1 }
 0x1c6   : > { %v385_v43 = vpop.f32.mrb[6].mxu0  ;;  %v428_v48 = vpop.f32.mrb[6].mxu1 }
 0x1c7   : > { %v439_v45 = vadd.f32 %v434_v38, %v328_v32  ;;  %v440_v46 = vadd.f32 %v434_v38, %v331_v34  ;;  %v752_v47 = vpop.f32.mrb[7].mxu0  ;;  %v441_v49 = vadd.f32 %v438_v42, %v334_v33  ;;  %v442_v50 = vadd.f32 %v438_v42, %v337_v35  ;;  %v758_v51 = vpop.f32.mrb[7].mxu1 }
 0x1c9   : > { %vm444_vm6 = vcmp.gt.f32.partialorder %v440_v46, 0.0  ;;  %v448_v52 = vmul.f32 0.2, %v440_v46  ;;  %vm443_vm7 = vcmp.gt.f32.partialorder %v439_v45, 0.0  ;;  %v447_v53 = vmul.f32 0.2, %v439_v45 }
 0x1ca   : > { %vm446_vm8 = vcmp.gt.f32.partialorder %v442_v50, 0.0  ;;  %v450_v54 = vmul.f32 0.2, %v442_v50  ;;  %vm445_vm9 = vcmp.gt.f32.partialorder %v441_v49, 0.0  ;;  %v449_v55 = vmul.f32 0.2, %v441_v49 }
 0x1cb   : > { %v452_v56 = vsel %vm444_vm6, %v440_v46, %v448_v52  ;;  %v451_v57 = vsel %vm443_vm7, %v439_v45, %v447_v53 }
 0x1cc   : > { %v464_v58 = vsel %vm458_vm3, %v452_v56, -9e+15  ;;  %v463_v59 = vsel %vm457_vm5, %v451_v57, -9e+15  ;;  %v454_v60 = vsel %vm446_vm8, %v442_v50, %v450_v54  ;;  %v453_v61 = vsel %vm445_vm9, %v441_v49, %v449_v55 }
 0x1cd   : > { %v471_v62 = vsel %vm467_vm4, %v464_v58, -inf  ;;  %v468_v63 = vsel %vm467_vm4, %v463_v59, -inf  ;;  %v466_v0 = vsel %vm458_vm3, %v454_v60, -9e+15  ;;  %v465_v1 = vsel %vm457_vm5, %v453_v61, -9e+15 }
 0x1ce   : > { %472 = vmax.xlane.f32.xlu1 %v471_v62  ;;  %469 = vmax.xlane.f32.xlu0 %v468_v63  ;;  %v477_v2 = vsel %vm467_vm4, %v466_v0, -inf  ;;  %v474_v3 = vsel %vm467_vm4, %v465_v1, -inf }
 0x1d2   : > { %478 = vmax.xlane.f32.xlu1 %v477_v2  ;;  %475 = vmax.xlane.f32.xlu0 %v474_v3 }
 0x25b   : > { %v473_v4 = vpop.xlane.xlu1 %472  ;;  %v470_v5 = vpop.xlane.xlu0 %469 }
 0x25c   : > { %v481_v6 = vsub.f32 %v464_v58, %v473_v4  ;;  %v480_v7 = vsub.f32 %v463_v59, %v470_v5 }
 0x25e   : > { %v486_v8 = vmul.f32 1.442695, %v481_v6  ;;  %v484_v9 = vmul.f32 1.442695, %v480_v7 }
 0x25f   : > { %v479_v10 = vpop.xlane.xlu1 %478  ;;  %v476_v11 = vpop.xlane.xlu0 %475 }
 0x260   : > { %783 = vpow2.f32 %v486_v8  ;;  %v483_v12 = vsub.f32 %v466_v0, %v479_v10  ;;  %v482_v13 = vsub.f32 %v465_v1, %v476_v11 }
 0x261   : > { %785 = vpow2.f32 %v484_v9 }
 0x262   : > { %v490_v14 = vmul.f32 1.442695, %v483_v12  ;;  %v488_v15 = vmul.f32 1.442695, %v482_v13 }
 0x264   : > { %787 = vpow2.f32 %v490_v14 }
 0x265   : > { %789 = vpow2.f32 %v488_v15 }
 0x26a   : > { %v784_v16 = vpop.eup %783 }
 0x26b   : > { %v786_v17 = vpop.eup %785  ;;  %v495_v18 = vsel %vm467_vm4, %v784_v16, 0.0 }
 0x26c   : > { %496 = vadd.xlane.f32.xlu1 %v495_v18  ;;  %v492_v19 = vsel %vm467_vm4, %v786_v17, 0.0 }
 0x26d   : > { %493 = vadd.xlane.f32.xlu0 %v492_v19 }
 0x26e   : > { %v788_v20 = vpop.eup %787 }
 0x26f   : > { %v790_v21 = vpop.eup %789  ;;  %v501_v22 = vsel %vm467_vm4, %v788_v20, 0.0 }
 0x270   : > { %502 = vadd.xlane.f32.xlu1 %v501_v22  ;;  %v498_v23 = vsel %vm467_vm4, %v790_v21, 0.0 }
 0x271   : > { %499 = vadd.xlane.f32.xlu0 %v498_v23 }
 0x2f9   : > { %v497_v24 = vpop.xlane.xlu1 %496 }
 0x2fa   : > { %791 = vrcp.f32 %v497_v24  ;;  %v494_v25 = vpop.xlane.xlu0 %493 }
 0x2fb   : > { %793 = vrcp.f32 %v494_v25 }
 0x2fd   : > { %v503_v26 = vpop.xlane.xlu1 %502 }
 0x2fe   : > { %795 = vrcp.f32 %v503_v26  ;;  %v500_v27 = vpop.xlane.xlu0 %499 }
 0x2ff   : > { %797 = vrcp.f32 %v500_v27 }
 0x304   : > { %v792_v28 = vpop.eup %791 }
 0x305   : > { %v794_v29 = vpop.eup %793  ;;  %v509_v30 = vmul.f32 %v792_v28, %v784_v16 }
 0x306   : > { %v508_v31 = vmul.f32 %v794_v29, %v786_v17 }
 0x308   : > { %v796_v32 = vpop.eup %795  ;;  %v512_v33 = vpack.c.bf16 %v509_v30, %v508_v31 }
 0x309   : > { %v798_v34 = vpop.eup %797  ;;  %v511_v35 = vmul.f32 %v796_v32, %v788_v20 }
 0x30a   : > { %v510_v36 = vmul.f32 %v798_v34, %v790_v21  ;;  %762 = vmatmul.mubr.msk.bf16.vlgmr.msra.gmra.mrb[8].mxu0 %vm467_vm4, %v512_v33 }
 0x30c   : > { %v513_v37 = vpack.c.bf16 %v511_v35, %v510_v36 }
 0x30e   : > { %768 = vmatmul.mubr.msk.bf16.vlgmr.msra.gmra.mrb[8].mxu1 %vm467_vm4, %v513_v37 }
 0x3dd   : > { %v551_v38 = vpop.f32.mrb[8].mxu0 }
 0x3de   : > { %v602_v39 = vmin.f32 %v551_v38, 0.0  ;;  %v763_v40 = vpop.f32.mrb[9].mxu0  ;;  %vm630_vm10 = vcmp.gt.f32.partialorder %v551_v38, 0.0 }
 0x3df   : > { %v554_v41 = vpop.f32.mrb[10].mxu0 }
 0x3e0   : > { %v606_v42 = vmul.f32 0.5, %v602_v39  ;;  %v614_v43 = vmul.f32 1.442695, %v602_v39  ;;  %v603_v44 = vmin.f32 %v554_v41, 0.0  ;;  %v764_v45 = vpop.f32.mrb[11].mxu0  ;;  %vm631_vm11 = vcmp.gt.f32.partialorder %v554_v41, 0.0 }
 0x3e1   : > { %v595_v46 = vpop.f32.mrb[8].mxu1 }
 0x3e2   : > { %v607_v47 = vmul.f32 0.5, %v603_v44  ;;  %v616_v48 = vmul.f32 1.442695, %v603_v44  ;;  %v604_v49 = vmin.f32 %v595_v46, 0.0  ;;  %v769_v50 = vpop.f32.mrb[9].mxu1  ;;  %799 = vpow2.f32 %v614_v43 }
 0x3e3   : > { %v598_v51 = vpop.f32.mrb[10].mxu1  ;;  %801 = vtanh.f32 %v606_v42  ;;  %vm632_vm12 = vcmp.gt.f32.partialorder %v595_v46, 0.0 }
 0x3e4   : > { %v608_v52 = vmul.f32 0.5, %v604_v49  ;;  %v618_v53 = vmul.f32 1.442695, %v604_v49  ;;  %v605_v54 = vmin.f32 %v598_v51, 0.0  ;;  %v770_v55 = vpop.f32.mrb[11].mxu1  ;;  %803 = vpow2.f32 %v616_v48 }
 0x3e5   : > { %805 = vtanh.f32 %v607_v47  ;;  %vm633_vm13 = vcmp.gt.f32.partialorder %v598_v51, 0.0 }
 0x3e6   : > { %v620_v56 = vmul.f32 1.442695, %v605_v54  ;;  %807 = vpow2.f32 %v618_v53  ;;  %v609_v57 = vmul.f32 0.5, %v605_v54 }
 0x3e7   : > { %809 = vtanh.f32 %v608_v52 }
 0x3e8   : > { %811 = vpow2.f32 %v620_v56 }
 0x3e9   : > { %813 = vtanh.f32 %v609_v57 }
 0x3ec   : > { %v800_v58 = vpop.eup %799 }
 0x3ed   : > { %v802_v59 = vpop.eup %801  ;;  %v622_v60 = vadd.f32 1.0, %v800_v58 }
 0x3ee   : > { %v804_v61 = vpop.eup %803 }
 0x3ef   : > { %v806_v62 = vpop.eup %805  ;;  %v626_v63 = vmul.f32 %v802_v59, %v622_v60  ;;  %v623_v0 = vadd.f32 1.0, %v804_v61 }
 0x3f0   : > { %v808_v1 = vpop.eup %807 }
 0x3f1   : > { %v810_v2 = vpop.eup %809  ;;  %v634_v3 = vsel %vm630_vm10, %v551_v38, %v626_v63  ;;  %v627_v4 = vmul.f32 %v806_v62, %v623_v0  ;;  %v624_v5 = vadd.f32 1.0, %v808_v1 }
 0x3f2   : > { %v812_v6 = vpop.eup %811  ;;  %638 = vst.msk [vmem:[%s204_s7] sm:$0xff] %vm217_vm2, %v634_v3 }
 0x3f3   : > { %v635_v7 = vsel %vm631_vm11, %v554_v41, %v627_v4  ;;  %v628_v8 = vmul.f32 %v810_v2, %v624_v5  ;;  %v625_v9 = vadd.f32 1.0, %v812_v6  ;;  %v814_v10 = vpop.eup %813 }
 0x3f4   : > { %639 = vst.msk [vmem:[%s204_s7 + $0x8] sm:$0xff] %vm217_vm2, %v635_v7 }
 0x3f5   : > { %v636_v11 = vsel %vm632_vm12, %v595_v46, %v628_v8  ;;  %v629_v12 = vmul.f32 %v814_v10, %v625_v9 }
 0x3f6   : > { %640 = vst.msk [vmem:[%s204_s7 + $0x10] sm:$0xff] %vm217_vm2, %v636_v11 }
 0x3f7   : > { %v637_v13 = vsel %vm633_vm13, %v598_v51, %v629_v12 }
 0x3f8   : > { %641 = vst.msk [vmem:[%s204_s7 + $0x18] sm:$0xff] %vm217_vm2, %v637_v13 }
 0x3f9 PF: > { %s14_s15 = sadd.s32 1, %s821_s15  }
 0x3fa   : > { %p11_p4 = scmp.ge.s32.totalorder %s14_s15, 4  }
 0x3fc   :  { %13 = sbr.rel (!%p11_p4) target bundleno = 1 (0x1), region = 66 }

</bundles_post_ra>
